<compile_context>
chip_gen: v7x
topology: tpu7x:2x2x1
jax: 0.10.0
libtpu: 0.0.40
codegen_flags: <defaults>
</compile_context>

<pallas_src>
import jax
import jax.numpy as jnp
from jax.experimental import pallas as pl
from jax.experimental.pallas import tpu as pltpu


def _dwt_kernel(x1_ref, x2_ref, x3_ref, x4_ref, o_ref):
    # x*_ref: (Cb, H2b, W2b) parity planes; o_ref: (4, Cb, H2b, W2b) = [LL, HL, LH, HH].
    x1 = x1_ref[...]   # even rows, even cols
    x2 = x2_ref[...]   # odd rows,  even cols
    x3 = x3_ref[...]   # even rows, odd cols
    x4 = x4_ref[...]   # odd rows,  odd cols
    a = x1 + x2
    b = x3 + x4
    c = x2 - x1
    d = x4 - x3
    o_ref[0] = (a + b) * 0.5   # LL =  x1 + x2 + x3 + x4   (each /2 folded in)
    o_ref[1] = (b - a) * 0.5   # HL = -x1 - x2 + x3 + x4
    o_ref[2] = (c + d) * 0.5   # LH = -x1 + x2 - x3 + x4
    o_ref[3] = (d - c) * 0.5   # HH =  x1 - x2 - x3 + x4


def _choose_blocks(C, H2, W2, itemsize, target_bytes):
    """Pick (Cb, H2b, W2b): lane-dense W2 blocks, 8-sublane-aligned H2 blocks,
    channel blocking so the 4-parity input block stays under target_bytes."""
    sublane = 8 * max(1, 4 // itemsize)          # 8 (f32), 16 (bf16), 32 (int8)
    w2b = W2 if W2 <= 512 else 512               # full dim or a multiple of 128
    if H2 <= sublane:
        h2b = H2                                 # full dim (allowed)
    else:
        h2b = max(sublane, (min(H2, 64) // sublane) * sublane)
    per_c = 4 * h2b * w2b * itemsize             # bytes for 4 parity planes of one channel
    cb = int(max(1, min(C, target_bytes // per_c)))
    return cb, h2b, w2b


def dwt(x, *, target_block_bytes=4 * 1024 * 1024):
    """Haar DWT matching dwt_init. x: (B, C, H, W) -> (B, 4C, H//2, W//2)."""
    B, C, H, W = x.shape
    assert H % 2 == 0 and W % 2 == 0
    H2, W2 = H // 2, W // 2
    itemsize = jnp.dtype(x.dtype).itemsize

    # One HBM pass: de-interleave row/col parity into their own (leading-ish) dims.
    # (B,C,H2,2,W2,2) view is free; perm (0,1,3,5,2,4) keeps parity dims adjacent to
    # their spatial dims -> fast XLA transpose.  Result: xt[b,c,r,s,h2,w2] = x[b,c,2h2+r,2w2+s].
    xt = jnp.transpose(x.reshape(B, C, H2, 2, W2, 2), (0, 1, 3, 5, 2, 4))

    tb = min(max(int(target_block_bytes), 16 * 1024), 8 * 1024 * 1024)
    Cb, H2b, W2b = _choose_blocks(C, H2, W2, itemsize, tb)
    nH, nW, nC = pl.cdiv(H2, H2b), pl.cdiv(W2, W2b), pl.cdiv(C, Cb)

    # Four views of the same array, one per (row parity r, col parity s).
    in_block = (None, Cb, None, None, H2b, W2b)

    def parity_map(r, s):
        return lambda hi, wi, b, ci: (b, ci, r, s, hi, wi)

    in_specs = [
        pl.BlockSpec(in_block, parity_map(0, 0)),   # x1: even row, even col
        pl.BlockSpec(in_block, parity_map(1, 0)),   # x2: odd row,  even col
        pl.BlockSpec(in_block, parity_map(0, 1)),   # x3: even row, odd col
        pl.BlockSpec(in_block, parity_map(1, 1)),   # x4: odd row,  odd col
    ]
    out_spec = pl.BlockSpec((None, 4, Cb, H2b, W2b),
                            lambda hi, wi, b, ci: (b, 0, ci, hi, wi))

    # Double-buffered inputs + double-buffered output + headroom; safe on v5e/v6e/v7x.
    block_bytes = 4 * Cb * H2b * W2b * itemsize
    vmem_limit = min(48 * 1024 * 1024,
                     max(16 * 1024 * 1024, 4 * block_bytes + 8 * 1024 * 1024))

    out = pl.pallas_call(
        _dwt_kernel,
        out_shape=jax.ShapeDtypeStruct((B, 4, C, H2, W2), x.dtype),
        grid_spec=pltpu.PrefetchScalarGridSpec(
            num_scalar_prefetch=0,
            grid=(nH, nW, B, nC),          # spatial axes first: megacore balance when B == 1
            in_specs=in_specs,
            out_specs=out_spec,
        ),
        compiler_params=pltpu.CompilerParams(
            dimension_semantics=("parallel", "parallel", "parallel", "parallel"),
            vmem_limit_bytes=vmem_limit,
        ),
    )(xt, xt, xt, xt)

    # (B, 4, C, H2, W2) -> (B, 4C, H2, W2): pure view reshape; channel = subband*C + c,
    # exactly matching torch.cat((LL, HL, LH, HH), dim=1).
    return out.reshape(B, 4 * C, H2, W2)


def _dwt_ref(x):
    # Pure-JAX reference mirroring dwt_init exactly.
    x01 = x[:, :, 0::2, :] / 2
    x02 = x[:, :, 1::2, :] / 2
    x1 = x01[:, :, :, 0::2]
    x2 = x02[:, :, :, 0::2]
    x3 = x01[:, :, :, 1::2]
    x4 = x02[:, :, :, 1::2]
    x_LL = x1 + x2 + x3 + x4
    x_HL = -x1 - x2 + x3 + x4
    x_LH = -x1 + x2 - x3 + x4
    x_HH = x1 - x2 - x3 + x4
    return jnp.concatenate((x_LL, x_HL, x_LH, x_HH), axis=1)


if __name__ == "__main__":
    key = jax.random.PRNGKey(0)
    k1, k2 = jax.random.split(key)

    # Canonical small shape.
    B, C, H, W = 2, 4, 16, 16
    x = jax.random.normal(k1, (B, C, H, W), dtype=jnp.float32)
    out = jax.block_until_ready(dwt(x))
    ref = _dwt_ref(x)
    assert out.shape == (B, 4 * C, H // 2, W // 2), out.shape
    assert jnp.allclose(out, ref, atol=1e-6, rtol=1e-5), float(jnp.max(jnp.abs(out - ref)))

    # Multi-block coverage: channel-blocked grid + partial (ragged) H2 block.
    x2 = jax.random.normal(k2, (1, 6, 100, 40), dtype=jnp.float32)
    out2 = jax.block_until_ready(dwt(x2, target_block_bytes=16 * 1024))
    ref2 = _dwt_ref(x2)
    assert out2.shape == (1, 24, 50, 20), out2.shape
    assert jnp.allclose(out2, ref2, atol=1e-6, rtol=1e-5), float(jnp.max(jnp.abs(out2 - ref2)))

    print("KERNEL_OK")
</pallas_src>

<mosaic_0001>
module attributes {stable_mosaic.version = 11 : i64} {
  func.func @_dwt_kernel(%arg0: i32, %arg1: i32, %arg2: i32, %arg3: i32, %arg4: memref<1x4x1x1x8x8xf32, #tpu.memory_space<vmem>>, %arg5: memref<1x4x1x1x8x8xf32, #tpu.memory_space<vmem>>, %arg6: memref<1x4x1x1x8x8xf32, #tpu.memory_space<vmem>>, %arg7: memref<1x4x1x1x8x8xf32, #tpu.memory_space<vmem>>, %arg8: memref<1x4x4x8x8xf32, #tpu.memory_space<vmem>>) attributes {dimension_semantics = [#tpu.dimension_semantics<parallel>, #tpu.dimension_semantics<parallel>, #tpu.dimension_semantics<parallel>, #tpu.dimension_semantics<parallel>], iteration_bounds = array<i64: 1, 1, 2, 1>, scalar_prefetch = 0 : i64, scratch_operands = 0 : i64, tpu.core_type = #tpu.core_type<tc>, window_params = [{transform_indices = @transform_0, window_bounds = array<i64: 1, 4, 1, 1, 8, 8>}, {transform_indices = @transform_1, window_bounds = array<i64: 1, 4, 1, 1, 8, 8>}, {transform_indices = @transform_2, window_bounds = array<i64: 1, 4, 1, 1, 8, 8>}, {transform_indices = @transform_3, window_bounds = array<i64: 1, 4, 1, 1, 8, 8>}, {transform_indices = @transform_4, window_bounds = array<i64: 1, 4, 4, 8, 8>}]} {
    %c0 = arith.constant 0 : index
    %c0_0 = arith.constant 0 : index
    %c0_1 = arith.constant 0 : index
    %c0_2 = arith.constant 0 : index
    %c0_3 = arith.constant 0 : index
    %c0_4 = arith.constant 0 : index
    %0 = vector.load %arg4[%c0, %c0_0, %c0_1, %c0_2, %c0_3, %c0_4] : memref<1x4x1x1x8x8xf32, #tpu.memory_space<vmem>>, vector<1x4x1x1x8x8xf32>
    %1 = vector.shape_cast %0 : vector<1x4x1x1x8x8xf32> to vector<4x8x8xf32>
    %c0_5 = arith.constant 0 : index
    %c0_6 = arith.constant 0 : index
    %c0_7 = arith.constant 0 : index
    %c0_8 = arith.constant 0 : index
    %c0_9 = arith.constant 0 : index
    %c0_10 = arith.constant 0 : index
    %2 = vector.load %arg5[%c0_5, %c0_6, %c0_7, %c0_8, %c0_9, %c0_10] : memref<1x4x1x1x8x8xf32, #tpu.memory_space<vmem>>, vector<1x4x1x1x8x8xf32>
    %3 = vector.shape_cast %2 : vector<1x4x1x1x8x8xf32> to vector<4x8x8xf32>
    %c0_11 = arith.constant 0 : index
    %c0_12 = arith.constant 0 : index
    %c0_13 = arith.constant 0 : index
    %c0_14 = arith.constant 0 : index
    %c0_15 = arith.constant 0 : index
    %c0_16 = arith.constant 0 : index
    %4 = vector.load %arg6[%c0_11, %c0_12, %c0_13, %c0_14, %c0_15, %c0_16] : memref<1x4x1x1x8x8xf32, #tpu.memory_space<vmem>>, vector<1x4x1x1x8x8xf32>
    %5 = vector.shape_cast %4 : vector<1x4x1x1x8x8xf32> to vector<4x8x8xf32>
    %c0_17 = arith.constant 0 : index
    %c0_18 = arith.constant 0 : index
    %c0_19 = arith.constant 0 : index
    %c0_20 = arith.constant 0 : index
    %c0_21 = arith.constant 0 : index
    %c0_22 = arith.constant 0 : index
    %6 = vector.load %arg7[%c0_17, %c0_18, %c0_19, %c0_20, %c0_21, %c0_22] : memref<1x4x1x1x8x8xf32, #tpu.memory_space<vmem>>, vector<1x4x1x1x8x8xf32>
    %7 = vector.shape_cast %6 : vector<1x4x1x1x8x8xf32> to vector<4x8x8xf32>
    %8 = arith.addf %1, %3 : vector<4x8x8xf32>
    %9 = arith.addf %5, %7 : vector<4x8x8xf32>
    %10 = arith.subf %3, %1 : vector<4x8x8xf32>
    %11 = arith.subf %7, %5 : vector<4x8x8xf32>
    %12 = arith.addf %8, %9 : vector<4x8x8xf32>
    %cst = arith.constant 5.000000e-01 : f32
    %13 = vector.broadcast %cst : f32 to vector<4x8x8xf32>
    %14 = arith.mulf %12, %13 : vector<4x8x8xf32>
    %c0_23 = arith.constant 0 : index
    %c0_24 = arith.constant 0 : index
    %c0_25 = arith.constant 0 : index
    %c0_26 = arith.constant 0 : index
    %c0_27 = arith.constant 0 : index
    %15 = vector.load %arg8[%c0_23, %c0_24, %c0_25, %c0_26, %c0_27] : memref<1x4x4x8x8xf32, #tpu.memory_space<vmem>>, vector<1x1x4x8x8xf32>
    %16 = vector.shape_cast %15 : vector<1x1x4x8x8xf32> to vector<4x8x8xf32>
    %17 = vector.shape_cast %14 : vector<4x8x8xf32> to vector<1x1x4x8x8xf32>
    tpu.vector_store %arg8[%c0_23, %c0_24, %c0_25, %c0_26, %c0_27], %17 {strides = array<i32>} : memref<1x4x4x8x8xf32, #tpu.memory_space<vmem>>, vector<1x1x4x8x8xf32>,
    %18 = arith.subf %9, %8 : vector<4x8x8xf32>
    %cst_28 = arith.constant 5.000000e-01 : f32
    %19 = vector.broadcast %cst_28 : f32 to vector<4x8x8xf32>
    %20 = arith.mulf %18, %19 : vector<4x8x8xf32>
    %c0_29 = arith.constant 0 : index
    %c1 = arith.constant 1 : index
    %c0_30 = arith.constant 0 : index
    %c0_31 = arith.constant 0 : index
    %c0_32 = arith.constant 0 : index
    %21 = vector.load %arg8[%c0_29, %c1, %c0_30, %c0_31, %c0_32] : memref<1x4x4x8x8xf32, #tpu.memory_space<vmem>>, vector<1x1x4x8x8xf32>
    %22 = vector.shape_cast %21 : vector<1x1x4x8x8xf32> to vector<4x8x8xf32>
    %23 = vector.shape_cast %20 : vector<4x8x8xf32> to vector<1x1x4x8x8xf32>
    tpu.vector_store %arg8[%c0_29, %c1, %c0_30, %c0_31, %c0_32], %23 {strides = array<i32>} : memref<1x4x4x8x8xf32, #tpu.memory_space<vmem>>, vector<1x1x4x8x8xf32>,
    %24 = arith.addf %10, %11 : vector<4x8x8xf32>
    %cst_33 = arith.constant 5.000000e-01 : f32
    %25 = vector.broadcast %cst_33 : f32 to vector<4x8x8xf32>
    %26 = arith.mulf %24, %25 : vector<4x8x8xf32>
    %c0_34 = arith.constant 0 : index
    %c2 = arith.constant 2 : index
    %c0_35 = arith.constant 0 : index
    %c0_36 = arith.constant 0 : index
    %c0_37 = arith.constant 0 : index
    %27 = vector.load %arg8[%c0_34, %c2, %c0_35, %c0_36, %c0_37] : memref<1x4x4x8x8xf32, #tpu.memory_space<vmem>>, vector<1x1x4x8x8xf32>
    %28 = vector.shape_cast %27 : vector<1x1x4x8x8xf32> to vector<4x8x8xf32>
    %29 = vector.shape_cast %26 : vector<4x8x8xf32> to vector<1x1x4x8x8xf32>
    tpu.vector_store %arg8[%c0_34, %c2, %c0_35, %c0_36, %c0_37], %29 {strides = array<i32>} : memref<1x4x4x8x8xf32, #tpu.memory_space<vmem>>, vector<1x1x4x8x8xf32>,
    %30 = arith.subf %11, %10 : vector<4x8x8xf32>
    %cst_38 = arith.constant 5.000000e-01 : f32
    %31 = vector.broadcast %cst_38 : f32 to vector<4x8x8xf32>
    %32 = arith.mulf %30, %31 : vector<4x8x8xf32>
    %c0_39 = arith.constant 0 : index
    %c3 = arith.constant 3 : index
    %c0_40 = arith.constant 0 : index
    %c0_41 = arith.constant 0 : index
    %c0_42 = arith.constant 0 : index
    %33 = vector.load %arg8[%c0_39, %c3, %c0_40, %c0_41, %c0_42] : memref<1x4x4x8x8xf32, #tpu.memory_space<vmem>>, vector<1x1x4x8x8xf32>
    %34 = vector.shape_cast %33 : vector<1x1x4x8x8xf32> to vector<4x8x8xf32>
    %35 = vector.shape_cast %32 : vector<4x8x8xf32> to vector<1x1x4x8x8xf32>
    tpu.vector_store %arg8[%c0_39, %c3, %c0_40, %c0_41, %c0_42], %35 {strides = array<i32>} : memref<1x4x4x8x8xf32, #tpu.memory_space<vmem>>, vector<1x1x4x8x8xf32>,
    return
  }
  func.func @transform_0(%arg0: i32, %arg1: i32, %arg2: i32, %arg3: i32) -> (i32, i32, i32, i32, i32, i32) {
    %c0_i32 = arith.constant 0 : i32
    %c0_i32_0 = arith.constant 0 : i32
    %c0_i32_1 = arith.constant 0 : i32
    return %arg2, %arg3, %c0_i32, %c0_i32_0, %arg0, %arg1 : i32, i32, i32, i32, i32, i32
  }
  func.func @transform_1(%arg0: i32, %arg1: i32, %arg2: i32, %arg3: i32) -> (i32, i32, i32, i32, i32, i32) {
    %c1_i32 = arith.constant 1 : i32
    %c0_i32 = arith.constant 0 : i32
    %c0_i32_0 = arith.constant 0 : i32
    return %arg2, %arg3, %c1_i32, %c0_i32, %arg0, %arg1 : i32, i32, i32, i32, i32, i32
  }
  func.func @transform_2(%arg0: i32, %arg1: i32, %arg2: i32, %arg3: i32) -> (i32, i32, i32, i32, i32, i32) {
    %c0_i32 = arith.constant 0 : i32
    %c1_i32 = arith.constant 1 : i32
    %c0_i32_0 = arith.constant 0 : i32
    return %arg2, %arg3, %c0_i32, %c1_i32, %arg0, %arg1 : i32, i32, i32, i32, i32, i32
  }
  func.func @transform_3(%arg0: i32, %arg1: i32, %arg2: i32, %arg3: i32) -> (i32, i32, i32, i32, i32, i32) {
    %c1_i32 = arith.constant 1 : i32
    %c1_i32_0 = arith.constant 1 : i32
    %c0_i32 = arith.constant 0 : i32
    return %arg2, %arg3, %c1_i32, %c1_i32_0, %arg0, %arg1 : i32, i32, i32, i32, i32, i32
  }
  func.func @transform_4(%arg0: i32, %arg1: i32, %arg2: i32, %arg3: i32) -> (i32, i32, i32, i32, i32) {
    %c0_i32 = arith.constant 0 : i32
    %c0_i32_0 = arith.constant 0 : i32
    return %arg2, %c0_i32, %arg3, %arg0, %arg1 : i32, i32, i32, i32, i32
  }
}

</mosaic_0001>

<bundles_post_ra>
// kernel: tpu_custom_call.1
= control target key start
LH: loop header
LB: loop body
LE: loop exit
PB: predicated region body
PF: predicated region fallthrough
CT: control target
= control target key end

     0   :  { %s1458_s0 = inlined_call_operand.hbm [shape: f32[2,4,2,2,8,8], index: 0, kind: input, shape index: {}]   ;;  %s1459_s1 = inlined_call_operand.hbm [shape: f32[2,4,2,2,8,8], index: 1, kind: input, shape index: {}]   ;;  %s1460_s2 = inlined_call_operand.hbm [shape: f32[2,4,2,2,8,8], index: 2, kind: input, shape index: {}]   ;;  %s1461_s3 = inlined_call_operand.hbm [shape: f32[2,4,2,2,8,8], index: 3, kind: input, shape index: {}]   ;;  %s1462_s4 = inlined_call_operand.hbm [shape: f32[2,4,4,8,8], index: 4, kind: output, shape index: {}]  }
   0x1   :  { %1477 = sst [smem:[#allocation21_spill]] %s1458_s0 }
   0x2   :  { %1478 = sst [smem:[#allocation22_spill]] %s1459_s1 }
   0x3   :  { %9 = vsyncpa [#allocation3], 0 }
   0x4   :  { %11 = vsyncpa [#allocation3 + $0x1], 0 }
   0x5   :  { %12 = vsyncpa [#allocation6], 0 }
   0x6   :  { %14 = vsyncpa [#allocation6 + $0x1], 0 }
   0x7   :  { %15 = vsyncpa [#allocation9], 0 }
   0x8   :  { %17 = vsyncpa [#allocation9 + $0x1], 0 }
   0x9   :  { %18 = vsyncpa [#allocation4], 0 }
   0xa   :  { %20 = vsyncpa [#allocation4 + $0x1], 0  ;;  %s1077_s15 = smov 0   ;;  %s1079_s16 = smov 0  }
   0xb   :  { %s1081_s17 = smov 0   ;;  %s1083_s18 = smov 0  }
   0xc   :  { %s1085_s19 = smov 0   ;;  %s1087_s20 = smov 0  }
   0xd LB: > { %1479 = sst [smem:[#allocation15_spill]] %s1028_s17  ;;  %s1108_s21 = sadd.s32 4294967295, %s1040_s20   ;;  %s1040_s20 = sphi %s1087_s20, %s26_s20   ;;  %s1036_s19 = sphi %s1085_s19, %s1507_s19   ;;  %s1032_s18 = sphi %s1083_s18, %s1506_s18   ;;  %s1028_s17 = sphi %s1081_s17, %s1505_s17   ;;  %s1024_s16 = sphi %s1079_s16, %s1509_s16   ;;  %s1020_s15 = sphi %s1077_s15, %s1508_s15  }
   0xe   : > { %1480 = sst [smem:[#allocation16_spill]] %s1036_s19  ;;  %s702_s22 = sadd.s32 4294967294, %s1040_s20  }
   0xf   : > { %1481 = sst [smem:[#allocation17_spill]] %s1040_s20  ;;  %s44_s23 = sadd.s32 1, %s1036_s19 }
  0x10   : > { %s65_s24 = sadd.s32 1, %s1028_s17  ;;  %p46_p0 = scmp.ge.s32.totalorder %s44_s23, 2 }
  0x11   : > { %p72_p1 = scmp.ne.s32.totalorder %s1028_s17, %s1024_s16  ;;  %p73_p2 = scmp.eq.s32.totalorder %s1040_s20, 0 }
  0x12   : > { %p78_p3 = scmp.ne.s32.totalorder %s1024_s16, %s1020_s15  ;;  %s1511_s23 = smov (%p46_p0, %s44_s23), 0 }
  0x13   : > { %1482 = sst [smem:[#allocation18_spill]] %s1511_s23  ;;  %p1120_p4 = por %p73_p2, %p72_p1 }
  0x14   : > { %p79_p5 = scmp.eq.s32.totalorder %s1108_s21, 0  ;;  %s56_s26 = ssub.s32 %s1036_s19, %s1511_s23 }
  0x15   : > { %p204_p6 = scmp.eq.s32.totalorder %s1108_s21, 1  ;;  %p63_p7 = scmp.eq.s32.totalorder %s56_s26, 0 }
  0x16   : > { %p1128_p8 = por %p79_p5, %p78_p3  ;;  %p210_p10 = scmp.eq.s32.totalorder %s702_s22, 1 }
  0x17   : > { %p1132_p9 = por %p204_p6, %p72_p1  ;;  %p772_p13 = scmp.lt.s32.totalorder %s1040_s20, 2 }
  0x18   : > { %s1484_s27 = scalar_select %p1128_p8, 1, 0 }
  0x19   : > { %s1485_s28 = scalar_select %p1132_p9, 1, 0 }
  0x1a   : > { %s1137_s29 = scalar_select %p63_p7, %s1028_s17, %s65_s24  }
  0x1b   : > { %p1139_p11 = por %p210_p10, %p78_p3  ;;  %s1146_s5 = sand.u32 1, %s1028_s17  }
  0x1c   : > { %1486 = sst [smem:[#allocation19_spill]] %s1137_s29  ;;  %s1149_s6 = sshll.u32 %s1146_s5, 5 }
  0x1d   : > { %s1487_s30 = scalar_select %p1139_p11, 1, 0 }
  0x1e   : > { %s1152_s7 = sshll.u32 %s1036_s19, 11  ;;  %p1156_p0 = pnand %p772_p13, %p1120_p4 }
  0x1f   : > { %1488 = sst [smem:[#allocation20_spill]] %s1487_s30  ;;  %s256_s9 = sand.u32 1, %s1040_s20  }
  0x20   : > { %s1490_s1 = sld [smem:[#allocation22_spill]]  ;;  %s260_s13 = scalar_lea.vmem [#allocation5], %s1149_s6 }
  0x21   : > { %s273_s14 = sshll.u32 %s260_s13, 4  ;;  %s1170_s24 = scalar_lea.sflag [#allocation6], %s256_s9  ;;  %s1168_s14 = int_to_ptr.vmem [resolvable:$true] %s273_s14 }
  0x22   : > { %p1175_p2 = pneg %p1156_p0 }
  0x26   : > { %s572_s12 = scalar_lea.hbm %s1490_s1, %s1152_s7  ;;  %s832_s13 = scalar_lea.hbm %s1490_s1, 4096 }
  0x27   : > { %s1166_s22 = scalar_lea.hbm %s572_s12, 256  ;;  %s857_s25 = scalar_lea.hbm %s572_s12, 768 }
  0x28   : > { %p828_p1 = scmp.ne.s32.totalorder %s1166_s22, %s857_s25  ;;  %p833_p5 = scmp.lt.u32.totalorder %s1166_s22, %s1490_s1 }
  0x29   : > { %p834_p6 = scmp.lt.u32.totalorder %s832_s13, %s857_s25  ;;  %p836_p10 = scmp.lt.u32.totalorder %s857_s25, %s1166_s22 }
  0x2a   : > { %p830_p3 = pnand %p1175_p2, %p828_p1 }
  0x2b   : > { %p835_p7 = por %p834_p6, %p833_p5 }
  0x2c   : > { %p831_p4 = pneg %p830_p3 }
  0x2d   : > { %p837_p13 = por %p836_p10, %p835_p7 }
  0x2f   : > { %p838_p12 = pnand %p837_p13, %p831_p4 }
  0x31   : > { %841 = shalt.err (!%p838_p12)
}
  0x32   : > { %s842_s9 = scalar_lea.vmem %s1168_s14, 512  ;;  %s1042_s12 = smov [#allocation5]  }
  0x33   : > { %p843_p1 = scmp.ne.s32.totalorder %s1168_s14, %s842_s9  ;;  %s847_s10 = sshll.u32 %s1042_s12, 4  ;;  %s848_s10 = int_to_ptr.vmem [resolvable:$false] %s847_s10 }
  0x34   : > { %s849_s19 = scalar_lea.vmem %s848_s10, 1024  ;;  %p850_p9 = scmp.lt.s32.totalorder %s1168_s14, %s848_s10 }
  0x35   : > { %p845_p3 = pnand %p843_p1, %p1175_p2  ;;  %p851_p8 = scmp.lt.s32.totalorder %s849_s19, %s842_s9 }
  0x37   : > { %p846_p11 = pneg %p845_p3  ;;  %p852_p5 = por %p851_p8, %p850_p9 }
  0x39   : > { %p853_p6 = pnand %p852_p5, %p846_p11 }
  0x3b   : > { %856 = shalt.err (!%p853_p6)
}
  0x3c   : > { %s1467_s23 = smov 512   ;;  %s1469_s25 = smov 128  }
  0x3d   : > { %s1471_s11 = smov 8   ;;  %p717_p8 = scmp.ge.s32.totalorder %s1040_s20, 1 }
  0x3e   : > { %761 = dma.hbm_to_vmem [thread:$0]  (!%p1156_p0), %s1166_s22, 512, %s1168_s14, %s1170_s24, %s1467_s23, %s1469_s25, %s1471_s11  }
  0x3f   : > { %p336_p9 = scmp.lt.s32.totalorder %s1040_s20, 3  ;;  %s1493_s0 = sld [smem:[#allocation21_spill]] }
  0x40   : > { %s234_s19 = scalar_lea.vmem [#allocation2], %s1149_s6  ;;  %s1221_s23 = scalar_lea.hbm %s1460_s2, %s1152_s7 }
  0x41   : > { %p1204_p11 = pnand %p717_p8, %p336_p9  ;;  %s246_s1 = sshll.u32 %s234_s19, 4  ;;  %s1215_s1 = int_to_ptr.vmem [resolvable:$true] %s246_s1 }
  0x42   : > { %s231_s25 = scalar_lea.sflag [#allocation3], %s1146_s5 }
  0x43   : > { %s1492_s13 = scalar_select %p1204_p11, 1, 0 }
  0x45   : > { %s1212_s10 = scalar_lea.hbm %s1493_s0, %s1152_s7  ;;  %s863_s29 = scalar_lea.hbm %s1493_s0, 4096 }
  0x46   : > { %s858_s11 = scalar_lea.hbm %s1212_s10, 512  ;;  %p864_p10 = scmp.lt.u32.totalorder %s1212_s10, %s1493_s0 }
  0x47   : > { %p859_p12 = scmp.ne.s32.totalorder %s1212_s10, %s858_s11  ;;  %p865_p13 = scmp.lt.u32.totalorder %s863_s29, %s858_s11 }
  0x48   : > { %p867_p3 = scmp.lt.u32.totalorder %s858_s11, %s1212_s10 }
  0x49   : > { %p861_p4 = pnand %p859_p12, %p1175_p2  ;;  %p866_p1 = por %p865_p13, %p864_p10 }
  0x4b   : > { %p862_p7 = pneg %p861_p4  ;;  %p868_p5 = por %p867_p3, %p866_p1 }
  0x4d   : > { %p869_p6 = pnand %p868_p5, %p862_p7 }
  0x4f   : > { %872 = shalt.err (!%p869_p6)
}
  0x50   : > { %s873_s19 = scalar_lea.vmem %s1215_s1, 512  ;;  %s1046_s14 = smov [#allocation2]  }
  0x51   : > { %p874_p8 = scmp.ne.s32.totalorder %s1215_s1, %s873_s19  ;;  %s878_s22 = sshll.u32 %s1046_s14, 4  ;;  %s879_s22 = int_to_ptr.vmem [resolvable:$false] %s878_s22 }
  0x52   : > { %s880_s17 = scalar_lea.vmem %s879_s22, 1024  ;;  %p881_p4 = scmp.lt.s32.totalorder %s1215_s1, %s879_s22 }
  0x53   : > { %p876_p9 = pnand %p874_p8, %p1175_p2  ;;  %p882_p11 = scmp.lt.s32.totalorder %s880_s17, %s873_s19 }
  0x55   : > { %p877_p12 = pneg %p876_p9  ;;  %p883_p10 = por %p882_p11, %p881_p4 }
  0x57   : > { %p884_p13 = pnand %p883_p10, %p877_p12 }
  0x59   : > { %887 = shalt.err (!%p884_p13)
}
  0x5a   : > { %s1494_s20 = smov 8   ;;  %s1495_s29 = smov 128  }
  0x5b   : > { %s1496_s11 = smov 512   ;;  %s1251_s9 = scalar_lea.hbm %s1221_s23, 128 }
  0x5c   : > { %758 = dma.hbm_to_vmem [thread:$0]  (!%p1156_p0), %s1212_s10, 512, %s1215_s1, %s231_s25, %s1496_s11, %s1495_s29, %s1494_s20  }
  0x5d   : > { %s287_s12 = scalar_lea.vmem [#allocation7], %s1149_s6  ;;  %s918_s14 = scalar_lea.hbm %s1221_s23, 640 }
  0x5e   : > { %s300_s19 = sshll.u32 %s287_s12, 4  ;;  %p889_p11 = scmp.ne.s32.totalorder %s1251_s9, %s918_s14  ;;  %s1254_s19 = int_to_ptr.vmem [resolvable:$true] %s300_s19 }
  0x5f   : > { %s893_s0 = scalar_lea.hbm %s1460_s2, 4096  ;;  %p894_p3 = scmp.lt.u32.totalorder %s1251_s9, %s1460_s2 }
  0x60   : > { %p891_p7 = pnand %p889_p11, %p1175_p2  ;;  %p895_p5 = scmp.lt.u32.totalorder %s893_s0, %s918_s14 }
  0x61   : > { %p897_p8 = scmp.lt.u32.totalorder %s918_s14, %s1251_s9 }
  0x62   : > { %p892_p1 = pneg %p891_p7  ;;  %p896_p6 = por %p895_p5, %p894_p3 }
  0x64   : > { %p898_p9 = por %p897_p8, %p896_p6 }
  0x66   : > { %p899_p12 = pnand %p898_p9, %p892_p1 }
  0x68   : > { %902 = shalt.err (!%p899_p12)
}
  0x69   : > { %s903_s23 = scalar_lea.vmem %s1254_s19, 512  ;;  %s1047_s25 = smov [#allocation7]  }
  0x6a   : > { %p904_p4 = scmp.ne.s32.totalorder %s1254_s19, %s903_s23  ;;  %s908_s10 = sshll.u32 %s1047_s25, 4  ;;  %s909_s10 = int_to_ptr.vmem [resolvable:$false] %s908_s10 }
  0x6b   : > { %s910_s30 = scalar_lea.vmem %s909_s10, 1024  ;;  %p911_p11 = scmp.lt.s32.totalorder %s1254_s19, %s909_s10 }
  0x6c   : > { %p906_p10 = pnand %p904_p4, %p1175_p2  ;;  %p912_p7 = scmp.lt.s32.totalorder %s910_s30, %s903_s23 }
  0x6e   : > { %p907_p13 = pneg %p906_p10  ;;  %p913_p3 = por %p912_p7, %p911_p11 }
  0x70   : > { %p914_p5 = pnand %p913_p3, %p907_p13 }
  0x72   : > { %917 = shalt.err (!%p914_p5)
}
  0x73   : > { %764 = dma.hbm_to_vmem [thread:$0]  (!%p1156_p0), %s1251_s9, 512, %s1254_s19, %s1170_s24, %s1496_s11, %s1495_s29, %s1494_s20  }
  0x74   : > { %s594_s14 = scalar_lea.hbm %s1461_s3, %s1152_s7  ;;  %s314_s17 = scalar_lea.vmem [#allocation8], %s1149_s6 }
  0x75   : > { %s1285_s22 = scalar_lea.hbm %s594_s14, 384  ;;  %s328_s1 = sshll.u32 %s314_s17, 4  ;;  %s1288_s1 = int_to_ptr.vmem [resolvable:$true] %s328_s1 }
  0x76   : > { %s311_s23 = scalar_lea.sflag [#allocation9], %s1146_s5  ;;  %s949_s25 = scalar_lea.hbm %s594_s14, 896 }
  0x77   : > { %p920_p1 = scmp.ne.s32.totalorder %s1285_s22, %s949_s25  ;;  %s924_s19 = scalar_lea.hbm %s1461_s3, 4096 }
  0x78   : > { %p925_p9 = scmp.lt.u32.totalorder %s1285_s22, %s1461_s3  ;;  %p926_p12 = scmp.lt.u32.totalorder %s924_s19, %s949_s25 }
  0x79   : > { %p922_p6 = pnand %p920_p1, %p1175_p2  ;;  %p928_p10 = scmp.lt.u32.totalorder %s949_s25, %s1285_s22 }
  0x7a   : > { %p927_p4 = por %p926_p12, %p925_p9 }
  0x7b   : > { %p923_p8 = pneg %p922_p6 }
  0x7c   : > { %p929_p13 = por %p928_p10, %p927_p4 }
  0x7e   : > { %p930_p11 = pnand %p929_p13, %p923_p8 }
  0x80   : > { %933 = shalt.err (!%p930_p11)
}
  0x81   : > { %s934_s6 = scalar_lea.vmem %s1288_s1, 512  ;;  %s1048_s30 = smov [#allocation8]  }
  0x82   : > { %p935_p7 = scmp.ne.s32.totalorder %s1288_s1, %s934_s6  ;;  %s939_s0 = sshll.u32 %s1048_s30, 4  ;;  %s940_s0 = int_to_ptr.vmem [resolvable:$false] %s939_s0 }
  0x83   : > { %s941_s12 = scalar_lea.vmem %s940_s0, 1024  ;;  %p942_p1 = scmp.lt.s32.totalorder %s1288_s1, %s940_s0 }
  0x84   : > { %p937_p3 = pnand %p935_p7, %p1175_p2  ;;  %p943_p6 = scmp.lt.s32.totalorder %s941_s12, %s934_s6 }
  0x86   : > { %p938_p5 = pneg %p937_p3  ;;  %p944_p9 = por %p943_p6, %p942_p1 }
  0x88   : > { %p945_p12 = pnand %p944_p9, %p938_p5 }
  0x8a   : > { %948 = shalt.err (!%p945_p12)
}
  0x8b   : > { %767 = dma.hbm_to_vmem [thread:$0]  (!%p1156_p0), %s1285_s22, 512, %s1288_s1, %s311_s23, %s1496_s11, %s1495_s29, %s1494_s20  }
  0x8c   : > { %p1497_p2 = scmp.ne.s32.totalorder %s1492_s13, 0 }
  0x8d   : > { %s1319_s26 = sand.u32 (!%p1497_p2), 1, %s1024_s16   ;;  %p1498_p8 = scmp.ne.s32.totalorder (!%p1497_p2), %s1484_s27, 0 }
  0x8e   : > { %340 = sbr.rel (%p1497_p2) target bundleno = 188 (0xbc), region = 36  ;;  %s718_s14 = sshll.u32 (!%p1497_p2), %s1319_s26, 5 }
  0x8f   : > { %s343_s17 = scalar_lea.sflag (!%p1497_p2), [#allocation3], %s1319_s26  ;;  %s1323_s8 = scalar_lea.vmem (!%p1497_p2), [#allocation2], %s718_s14 }
  0x95   : > { %1003 = dma.done.wait (%p1498_p8), %s343_s17, 512  }
  0x96   : > { %1005 = vsyncadd (%p1498_p8), %s343_s17, 4294966784  ;;  %s351_s5 = sand.u32 1, %s1108_s21   ;;  %s1330_s20 = scalar_lea.vmem [#allocation5], %s718_s14 }
  0x97   : > { %s352_s13 = scalar_lea.sflag [#allocation6], %s351_s5 }
  0x98   : > { %1007 = dma.done.wait (%p1498_p8), %s352_s13, 1024  }
  0x99   : > { %1009 = vsyncadd (%p1498_p8), %s352_s13, 4294966272  ;;  %s1336_s29 = scalar_lea.vmem [#allocation7], %s718_s14  ;;  %s370_s11 = scalar_lea.sflag [#allocation9], %s1319_s26 }
  0x9a   : > { %s1339_s22 = scalar_lea.vmem [#allocation8], %s718_s14 }
  0x9b   : > { %1011 = dma.done.wait (%p1498_p8), %s370_s11, 512  }
  0x9c   : > { %1013 = vsyncadd (%p1498_p8), %s370_s11, 4294966784  ;;  %v418_v0 = vld [vmem:[%s1323_s8] sm:$0xff]  ;;  %v419_v5 = vld [vmem:[%s1323_s8 + $0x8] sm:$0xff]  ;;  %s722_s21 = sshll.u32 %s1319_s26, 7  ;;  %vm458_vm0 = vcmask 64512   ;;  %s744_s1 = sshll.u32 %s1032_s18, 11 }
  0x9d   : > { %v422_v1 = vld [vmem:[%s1330_s20] sm:$0xff]  ;;  %v423_v6 = vld [vmem:[%s1330_s20 + $0x8] sm:$0xff]  ;;  %v420_v12 = vld [vmem:[%s1323_s8 + $0x10] sm:$0xff]  ;;  %s1367_s27 = scalar_lea.vmem [#allocation10], %s722_s21  ;;  %s1395_s24 = scalar_lea.hbm %s1462_s4, %s744_s1 }
  0x9e   : > { %v426_v2 = vld [vmem:[%s1336_s29] sm:$0xff]  ;;  %v434_v4 = vadd.f32 %v422_v1, %v418_v0  ;;  %v1351_v7 = vsub.f32 %v422_v1, %v418_v0  ;;  %v427_v9 = vld [vmem:[%s1336_s29 + $0x8] sm:$0xff]  ;;  %v435_v11 = vadd.f32 %v423_v6, %v419_v5  ;;  %v424_v15 = vld [vmem:[%s1330_s20 + $0x10] sm:$0xff]  ;;  %v443_v18 = vsub.f32 %v423_v6, %v419_v5  ;;  %s520_s23 = sshll.u32 %s1367_s27, 4  ;;  %s503_s9 = scalar_lea.sflag [#allocation4], %s1319_s26  ;;  %s1397_s23 = int_to_ptr.vmem [resolvable:$true] %s520_s23 }
  0x9f   : > { %v430_v3 = vld [vmem:[%s1339_s22] sm:$0xff]  ;;  %v431_v10 = vld [vmem:[%s1339_s22 + $0x8] sm:$0xff]  ;;  %v428_v16 = vld [vmem:[%s1336_s29 + $0x10] sm:$0xff]  ;;  %v436_v21 = vadd.f32 %v424_v15, %v420_v12  ;;  %v444_v45 = vsub.f32 %v424_v15, %v420_v12  ;;  %s950_s19 = scalar_lea.vmem %s1397_s23, 2048  ;;  %p1499_p4 = scmp.ne.s32.totalorder %s1485_s28, 0 }
  0xa0   : > { %v438_v8 = vadd.f32 %v430_v3, %v426_v2  ;;  %v446_v13 = vsub.f32 %v430_v3, %v426_v2  ;;  %v439_v14 = vadd.f32 %v431_v10, %v427_v9  ;;  %v432_v17 = vld [vmem:[%s1339_s22 + $0x10] sm:$0xff]  ;;  %v447_v19 = vsub.f32 %v431_v10, %v427_v9  ;;  %v421_v23 = vld [vmem:[%s1323_s8 + $0x18] sm:$0xff]  ;;  %p951_p0 = scmp.ne.s32.totalorder %s1397_s23, %s950_s19  ;;  %s1049_s7 = smov [#allocation10]  }
  0xa1   : > { %v440_v22 = vadd.f32 %v432_v17, %v428_v16  ;;  %v425_v24 = vld [vmem:[%s1330_s20 + $0x18] sm:$0xff]  ;;  %v448_v46 = vsub.f32 %v432_v17, %v428_v16  ;;  %s954_s10 = sshll.u32 %s1049_s7, 4  ;;  %s955_s10 = int_to_ptr.vmem [resolvable:$false] %s954_s10 }
  0xa2   : > { %v450_v20 = vadd.f32 %v438_v8, %v434_v4  ;;  %v429_v25 = vld [vmem:[%s1336_s29 + $0x18] sm:$0xff]  ;;  %v463_v26 = vsub.f32 %v438_v8, %v434_v4  ;;  %v451_v27 = vadd.f32 %v439_v14, %v435_v11  ;;  %v437_v29 = vadd.f32 %v425_v24, %v421_v23  ;;  %p952_p10 = pnand %p951_p0, %p1499_p4  ;;  %s956_s6 = scalar_lea.vmem %s955_s10, 4096 }
  0xa3   : > { %v433_v28 = vld [vmem:[%s1339_s22 + $0x18] sm:$0xff]  ;;  %v464_v30 = vsub.f32 %v439_v14, %v435_v11  ;;  %v476_v31 = vadd.f32 %v446_v13, %v1351_v7  ;;  %v452_v33 = vadd.f32 %v440_v22, %v436_v21  ;;  %v465_v38 = vsub.f32 %v440_v22, %v436_v21  ;;  %p957_p11 = scmp.lt.s32.totalorder %s1397_s23, %s955_s10  ;;  %p958_p7 = scmp.lt.s32.totalorder %s956_s6, %s950_s19 }
  0xa4   : > { %v454_v32 = vmul.f32 0.5, %v450_v20  ;;  %v441_v34 = vadd.f32 %v433_v28, %v429_v25  ;;  %v467_v35 = vmul.f32 0.5, %v463_v26  ;;  %v455_v36 = vmul.f32 0.5, %v451_v27  ;;  %p953_p13 = pneg %p952_p10 }
  0xa5   : > { %v468_v37 = vmul.f32 0.5, %v464_v30  ;;  %v480_v39 = vmul.f32 0.5, %v476_v31  ;;  %v456_v40 = vmul.f32 0.5, %v452_v33  ;;  %v477_v43 = vadd.f32 %v447_v19, %v443_v18  ;;  %p959_p3 = por %p958_p7, %p957_p11 }
  0xa6   : > { %459 = vst.msk [vmem:[%s1367_s27] sm:$0xff] %vm458_vm0, %v454_v32  ;;  %v453_v41 = vadd.f32 %v441_v34, %v437_v29  ;;  %723 = vst.msk [vmem:[%s1367_s27 + $0x20] sm:$0xff] %vm458_vm0, %v467_v35  ;;  %v466_v42 = vsub.f32 %v441_v34, %v437_v29  ;;  %v469_v44 = vmul.f32 0.5, %v465_v38  ;;  %v445_v47 = vsub.f32 %v425_v24, %v421_v23 }
  0xa7   : > { %460 = vst.msk [vmem:[%s1367_s27 + $0x8] sm:$0xff] %vm458_vm0, %v455_v36  ;;  %724 = vst.msk [vmem:[%s1367_s27 + $0x28] sm:$0xff] %vm458_vm0, %v468_v37  ;;  %v481_v50 = vmul.f32 0.5, %v477_v43  ;;  %v449_v51 = vsub.f32 %v433_v28, %v429_v25  ;;  %v478_v52 = vadd.f32 %v448_v46, %v444_v45  ;;  %v489_v53 = vsub.f32 %v446_v13, %v1351_v7  ;;  %p960_p5 = pnand %p959_p3, %p953_p13 }
  0xa8   : > { %727 = vst.msk [vmem:[%s1367_s27 + $0x40] sm:$0xff] %vm458_vm0, %v480_v39  ;;  %461 = vst.msk [vmem:[%s1367_s27 + $0x10] sm:$0xff] %vm458_vm0, %v456_v40  ;;  %v457_v48 = vmul.f32 0.5, %v453_v41  ;;  %v470_v49 = vmul.f32 0.5, %v466_v42  ;;  %v490_v54 = vsub.f32 %v447_v19, %v443_v18  ;;  %v491_v55 = vsub.f32 %v448_v46, %v444_v45 }
  0xa9   : > { %725 = vst.msk [vmem:[%s1367_s27 + $0x30] sm:$0xff] %vm458_vm0, %v469_v44  ;;  %728 = vst.msk [vmem:[%s1367_s27 + $0x48] sm:$0xff] %vm458_vm0, %v481_v50  ;;  %v479_v56 = vadd.f32 %v449_v51, %v445_v47  ;;  %v492_v57 = vsub.f32 %v449_v51, %v445_v47  ;;  %v482_v58 = vmul.f32 0.5, %v478_v52  ;;  %v493_v59 = vmul.f32 0.5, %v489_v53 }
  0xaa   : > { %462 = vst.msk [vmem:[%s1367_s27 + $0x18] sm:$0xff] %vm458_vm0, %v457_v48  ;;  %726 = vst.msk [vmem:[%s1367_s27 + $0x38] sm:$0xff] %vm458_vm0, %v470_v49  ;;  %v494_v60 = vmul.f32 0.5, %v490_v54  ;;  %v495_v61 = vmul.f32 0.5, %v491_v55 }
  0xab   : > { %v483_v62 = vmul.f32 0.5, %v479_v56  ;;  %v496_v63 = vmul.f32 0.5, %v492_v57  ;;  %729 = vst.msk [vmem:[%s1367_s27 + $0x50] sm:$0xff] %vm458_vm0, %v482_v58  ;;  %731 = vst.msk [vmem:[%s1367_s27 + $0x60] sm:$0xff] %vm458_vm0, %v493_v59 }
  0xac   : > { %732 = vst.msk [vmem:[%s1367_s27 + $0x68] sm:$0xff] %vm458_vm0, %v494_v60  ;;  %733 = vst.msk [vmem:[%s1367_s27 + $0x70] sm:$0xff] %vm458_vm0, %v495_v61 }
  0xad   : > { %730 = vst.msk [vmem:[%s1367_s27 + $0x58] sm:$0xff] %vm458_vm0, %v483_v62  ;;  %734 = vst.msk [vmem:[%s1367_s27 + $0x78] sm:$0xff] %vm458_vm0, %v496_v63 }
  0xae   : > { %963 = shalt.err (!%p960_p5)
}
  0xaf   : > { %s964_s30 = scalar_lea.hbm %s1395_s24, 2048  ;;  %s968_s14 = scalar_lea.hbm %s1462_s4, 4096 }
  0xb0   : > { %p965_p1 = scmp.ne.s32.totalorder %s1395_s24, %s964_s30  ;;  %p969_p12 = scmp.lt.u32.totalorder %s1395_s24, %s1462_s4 }
  0xb1   : > { %p970_p2 = scmp.lt.u32.totalorder %s968_s14, %s964_s30  ;;  %p972_p0 = scmp.lt.u32.totalorder %s964_s30, %s1395_s24 }
  0xb2   : > { %p966_p6 = pnand %p965_p1, %p1499_p4 }
  0xb3   : > { %p971_p8 = por %p970_p2, %p969_p12 }
  0xb4   : > { %p967_p9 = pneg %p966_p6 }
  0xb5   : > { %p973_p10 = por %p972_p0, %p971_p8 }
  0xb7   : > { %p974_p13 = pnand %p973_p10, %p967_p9 }
  0xb9   : > { %977 = shalt.err (!%p974_p13)
}
  0xba   : > { %s1050_s5 = smov 128   ;;  %s1051_s13 = smov 8  }
  0xbb   : > { %753 = dma.vmem_to_hbm [thread:$0]  (%p1499_p4), %s1397_s23, 2048, %s1395_s24, %s503_s9, %s1050_s5, %s1050_s5, %s1051_s13  }
  0xbc PF: > { %s1500_s20 = sld [smem:[#allocation20_spill]]  ;;  %s1501_s29 = sld [smem:[#allocation17_spill]] }
  0xbd   : > { %s535_s11 = sand.u32 1, %s1020_s15  }
  0xbe   : > { %s536_s22 = scalar_lea.sflag [#allocation4], %s535_s11 }
  0xc2   : > { %p1502_p11 = scmp.ne.s32.totalorder %s1500_s20, 0  ;;  %p1503_p7 = scmp.ge.s32.totalorder %s1501_s29, 2 }
  0xc4   : > { %p769_p3 = pnand %p1503_p7, %p1502_p11 }
  0xc6   : > { %1015 = dma.done.wait (!%p769_p3), %s536_s22, 2048  }
  0xc7   : > { %1017 = vsyncadd (!%p769_p3), %s536_s22, 4294965248  ;;  %s26_s20 = sadd.s32 1, %s1501_s29   ;;  %s1504_s21 = sld [smem:[#allocation15_spill]] }
  0xc8   : > { %p23_p5 = scmp.ge.s32.totalorder %s26_s20, 4   ;;  %s1505_s17 = sld [smem:[#allocation19_spill]] }
  0xc9   : > { %s1506_s18 = sld [smem:[#allocation16_spill]]  ;;  %s1507_s19 = sld [smem:[#allocation18_spill]] }
  0xca   : > { %s1508_s15 = smov %s1024_s16  ;;  %25 = sbr.rel (!%p23_p5) target bundleno = 13 (0xd), region = 121 }
  0xcd   : > { %s1509_s16 = smov %s1504_s21 }
  0xd1   :  { %541 = vsyncpa [#allocation3], 1 }
  0xd2   :  { %543 = vsyncpa [#allocation3 + $0x1], 1 }
  0xd3   :  { %544 = vsyncpa [#allocation6], 1 }
  0xd4   :  { %546 = vsyncpa [#allocation6 + $0x1], 1 }
  0xd5   :  { %547 = vsyncpa [#allocation9], 1 }
  0xd6   :  { %549 = vsyncpa [#allocation9 + $0x1], 1 }
  0xd7   :  { %550 = vsyncpa [#allocation4], 1 }
  0xd8   :  { %552 = vsyncpa [#allocation4 + $0x1], 1 }

</bundles_post_ra>
